<compile_context>
chip_gen: v7x
topology: tpu7x:2x2x1
jax: 0.10.0
libtpu: 0.0.40
codegen_flags: <defaults>
</compile_context>

<pallas_src>
import functools

import jax
import jax.numpy as jnp
from jax import lax
from jax.experimental import pallas as pl
from jax.experimental.pallas import tpu as pltpu

REC = 20          # floats per precomputed face record (19 used + 1 pad)
TILE_ROWS = 16    # pixel tile = (TILE_ROWS sublanes x 128 lanes) = 2048 pixels


def _rasterize_kernel(nf_ref, rec_ref, fid_ref,
                      p2f_ref, zbuf_ref, bary_ref, dist_ref,
                      *, F, H, W):
    """One grid point = one (batch, pixel-tile).  Loops over the compacted
    faces of that batch element keeping the z-buffer state in registers."""
    b = pl.program_id(0)
    tr = pl.program_id(1)
    tc = pl.program_id(2)

    # Pixel-center NDC coords for this tile, generated in-register.
    # PyTorch3D square-image convention: +X left, +Y up, ndc = 1 - 2*(i+0.5)/S.
    r_iota = lax.broadcasted_iota(jnp.int32, (TILE_ROWS, 128), 0).astype(jnp.float32)
    c_iota = lax.broadcasted_iota(jnp.int32, (TILE_ROWS, 128), 1).astype(jnp.float32)
    row = (tr * TILE_ROWS).astype(jnp.float32) + r_iota
    col = (tc * 128).astype(jnp.float32) + c_iota
    px = 1.0 - (2.0 / float(W)) * (col + 0.5)
    py = 1.0 - (2.0 / float(H)) * (row + 0.5)

    base = b * F
    nf_b = nf_ref[b]            # number of relevant (compacted) faces

    def body(i, carry):
        zb, pf, l0b, l1b, db = carry
        off = (base + i) * REC
        # Precomputed face record (wrapper-side): vertices, edge deltas,
        # scalar reciprocals.  ~20 SMEM scalar loads per face, hidden under
        # the ~80 vector ops on the (TILE_ROWS,128) tile.
        x0 = rec_ref[off + 0]; y0 = rec_ref[off + 1]; z0 = rec_ref[off + 2]
        x1 = rec_ref[off + 3]; y1 = rec_ref[off + 4]; z1 = rec_ref[off + 5]
        x2 = rec_ref[off + 6]; y2 = rec_ref[off + 7]; z2 = rec_ref[off + 8]
        e01x = rec_ref[off + 9];  e01y = rec_ref[off + 10]
        e12x = rec_ref[off + 11]; e12y = rec_ref[off + 12]
        e20x = rec_ref[off + 13]; e20y = rec_ref[off + 14]
        inv_area = rec_ref[off + 15]
        il01 = rec_ref[off + 16]
        il12 = rec_ref[off + 17]
        il20 = rec_ref[off + 18]
        fid = fid_ref[base + i]         # packed face index (b*F + f)

        # Pixel -> vertex deltas (computed once, shared).
        dx0 = px - x0; dy0 = py - y0
        dx1 = px - x1; dy1 = py - y1
        dx2 = px - x2; dy2 = py - y2

        # Edge functions -> screen-space barycentrics (both windings OK).
        l0 = (e12x * dy1 - e12y * dx1) * inv_area
        l1 = (e20x * dy2 - e20y * dx2) * inv_area
        l2 = (e01x * dy0 - e01y * dx0) * inv_area
        inside = (l0 >= 0.0) & (l1 >= 0.0) & (l2 >= 0.0)

        # Perspective-incorrect depth interpolation (PyTorch3D default).
        z = l0 * z0 + l1 * z1 + l2 * z2
        valid = inside & (z > 0.0)

        def seg_d2(dxa, dya, ex, ey, inv_l2):
            # Squared distance from every pixel to segment a->b.
            t = jnp.clip((dxa * ex + dya * ey) * inv_l2, 0.0, 1.0)
            rx = dxa - t * ex
            ry = dya - t * ey
            return rx * rx + ry * ry

        d2 = jnp.minimum(seg_d2(dx0, dy0, e01x, e01y, il01),
                         jnp.minimum(seg_d2(dx1, dy1, e12x, e12y, il12),
                                     seg_d2(dx2, dy2, e20x, e20y, il20)))
        sdist = jnp.where(inside, -d2, d2)

        upd = valid & (z < zb)
        zb = jnp.where(upd, z, zb)
        pf = jnp.where(upd, fid, pf)
        l0b = jnp.where(upd, l0, l0b)
        l1b = jnp.where(upd, l1, l1b)
        db = jnp.where(upd, sdist, db)
        return zb, pf, l0b, l1b, db

    init = (jnp.full((TILE_ROWS, 128), 1e30, jnp.float32),
            jnp.full((TILE_ROWS, 128), -1, jnp.int32),
            jnp.full((TILE_ROWS, 128), -1.0, jnp.float32),
            jnp.full((TILE_ROWS, 128), -1.0, jnp.float32),
            jnp.full((TILE_ROWS, 128), -1.0, jnp.float32))
    zb, pf, l0b, l1b, db = lax.fori_loop(0, nf_b, body, init)

    # Tile epilogue: single lane-dense store per output plane.
    hit = pf >= 0
    p2f_ref[0] = pf
    zbuf_ref[0] = jnp.where(hit, zb, -1.0)
    bary_ref[0, 0] = l0b                                   # already -1 where no hit
    bary_ref[0, 1] = l1b
    bary_ref[0, 2] = jnp.where(hit, 1.0 - l0b - l1b, -1.0)  # b2 recomputed here
    dist_ref[0] = db                                        # already -1 where no hit


def mesh_renderer_scannet(verts, faces, image_size=16, focal=1.0, z_near=1e-2):
    """Equivalent of MeshRendererScannet.forward: rasterize a batch of
    (equal-size) meshes and return the Fragments (the shader is unused).
    Matches PyTorch3D defaults: perspective_correct=False, blur_radius=0, K=1."""
    B, V, _ = verts.shape
    _, F, _ = faces.shape
    H = W = int(image_size)
    W_pad = ((W + 127) // 128) * 128
    H_pad = ((H + TILE_ROWS - 1) // TILE_ROWS) * TILE_ROWS

    verts = verts.astype(jnp.float32)

    # ---- plain-JAX glue: gather, project, per-face precompute & culling ----
    face_verts = jax.vmap(lambda v, f: v[f])(verts, faces)      # (B, F, 3, 3)
    X = face_verts[..., 0]
    Y = face_verts[..., 1]
    Z = face_verts[..., 2]
    eps = 1e-8
    # Sign-preserving near-zero guard (does NOT flip slightly-negative Z).
    Z_safe = jnp.where(jnp.abs(Z) < eps, jnp.where(Z < 0.0, -eps, eps), Z)
    xn = focal * X / Z_safe
    yn = focal * Y / Z_safe

    x0, x1, x2 = xn[..., 0], xn[..., 1], xn[..., 2]              # (B, F)
    y0, y1, y2 = yn[..., 0], yn[..., 1], yn[..., 2]
    z0, z1, z2 = Z[..., 0], Z[..., 1], Z[..., 2]

    e01x = x1 - x0; e01y = y1 - y0
    e12x = x2 - x1; e12y = y2 - y1
    e20x = x0 - x2; e20y = y0 - y2
    area = e01y * e20x - e01x * e20y
    nondegen = jnp.abs(area) >= 1e-8
    inv_area = 1.0 / jnp.where(nondegen, area, 1.0)
    il01 = 1.0 / jnp.maximum(e01x * e01x + e01y * e01y, 1e-12)
    il12 = 1.0 / jnp.maximum(e12x * e12x + e12y * e12y, 1e-12)
    il20 = 1.0 / jnp.maximum(e20x * e20x + e20y * e20y, 1e-12)

    # Wrapper-side culling: bbox-vs-image, degeneracy, near plane.
    px_hi = 1.0 - 1.0 / float(W); px_lo = -px_hi
    py_hi = 1.0 - 1.0 / float(H); py_lo = -py_hi
    xmin = jnp.minimum(jnp.minimum(x0, x1), x2)
    xmax = jnp.maximum(jnp.maximum(x0, x1), x2)
    ymin = jnp.minimum(jnp.minimum(y0, y1), y2)
    ymax = jnp.maximum(jnp.maximum(y0, y1), y2)
    zmin = jnp.minimum(jnp.minimum(z0, z1), z2)
    relevant = (nondegen
                & (xmax >= px_lo) & (xmin <= px_hi)
                & (ymax >= py_lo) & (ymin <= py_hi)
                & (zmin > z_near))

    rec = jnp.stack([x0, y0, z0, x1, y1, z1, x2, y2, z2,
                     e01x, e01y, e12x, e12y, e20x, e20y,
                     inv_area, il01, il12, il20,
                     jnp.zeros_like(area)], axis=-1)             # (B, F, REC)

    # Compact: relevant faces first; padded/culled slots zeroed (harmless).
    order = jnp.argsort(jnp.logical_not(relevant).astype(jnp.int32),
                        axis=1, stable=True)                     # (B, F)
    mask_s = jnp.take_along_axis(relevant, order, axis=1)
    rec_s = jnp.take_along_axis(rec, order[..., None], axis=1)
    rec_s = jnp.where(mask_s[..., None], rec_s, 0.0)
    fid = (jnp.arange(B, dtype=jnp.int32)[:, None] * F
           + jnp.arange(F, dtype=jnp.int32)[None, :])            # faces_packed() idx
    fid_s = jnp.take_along_axis(jnp.where(relevant, fid, -1), order, axis=1)
    nf = jnp.sum(relevant, axis=1).astype(jnp.int32)             # (B,)

    rec_flat = rec_s.reshape(-1).astype(jnp.float32)             # 1-D -> SMEM
    fid_flat = fid_s.reshape(-1).astype(jnp.int32)               # 1-D -> SMEM

    kernel = functools.partial(_rasterize_kernel, F=F, H=H, W=W)
    out_shapes = (
        jax.ShapeDtypeStruct((B, H_pad, W_pad), jnp.int32),       # pix_to_face
        jax.ShapeDtypeStruct((B, H_pad, W_pad), jnp.float32),     # zbuf
        jax.ShapeDtypeStruct((B, 3, H_pad, W_pad), jnp.float32),  # bary
        jax.ShapeDtypeStruct((B, H_pad, W_pad), jnp.float32),     # dists
    )

    grid_spec = pltpu.PrefetchScalarGridSpec(
        num_scalar_prefetch=1,                                    # per-batch face counts
        grid=(B, H_pad // TILE_ROWS, W_pad // 128),
        in_specs=[
            pl.BlockSpec(memory_space=pltpu.MemorySpace.SMEM),    # face records
            pl.BlockSpec(memory_space=pltpu.MemorySpace.SMEM),    # packed face ids
        ],
        out_specs=(
            pl.BlockSpec((1, TILE_ROWS, 128), lambda b, r, c, nf_s: (b, r, c)),
            pl.BlockSpec((1, TILE_ROWS, 128), lambda b, r, c, nf_s: (b, r, c)),
            pl.BlockSpec((1, 3, TILE_ROWS, 128), lambda b, r, c, nf_s: (b, 0, r, c)),
            pl.BlockSpec((1, TILE_ROWS, 128), lambda b, r, c, nf_s: (b, r, c)),
        ),
    )

    p2f, zbuf, bary, dists = pl.pallas_call(
        kernel,
        out_shape=out_shapes,
        grid_spec=grid_spec,
        compiler_params=pltpu.CompilerParams(
            dimension_semantics=("parallel", "parallel", "parallel"),
            vmem_limit_bytes=16 * 1024 * 1024,
        ),
    )(nf, rec_flat, fid_flat)

    # Strip lane/sublane padding back to (H, W) images.
    p2f_img = p2f[:, :H, :W]
    zbuf_img = zbuf[:, :H, :W]
    dists_img = dists[:, :H, :W]
    bary_img = bary[:, :, :H, :W]                                 # (B, 3, H, W)

    # Fragments convention with faces_per_pixel K = 1.
    fragments = {
        "pix_to_face": p2f_img[..., None],                                       # (B,H,W,1)
        "zbuf": zbuf_img[..., None],                                             # (B,H,W,1)
        "bary_coords": jnp.transpose(bary_img, (0, 2, 3, 1))[:, :, :, None, :],  # (B,H,W,1,3)
        "dists": dists_img[..., None],                                           # (B,H,W,1)
    }
    return fragments


if __name__ == "__main__":
    key = jax.random.PRNGKey(0)
    B, V, F, IMG = 2, 16, 24, 16
    kxy, kz, kf = jax.random.split(key, 3)
    xy = jax.random.uniform(kxy, (B, V, 2), minval=-1.0, maxval=1.0)
    z = jax.random.uniform(kz, (B, V, 1), minval=2.0, maxval=4.0)
    verts = jnp.concatenate([xy, z], axis=-1).astype(jnp.float32)      # (B,V,3)
    faces = jax.random.randint(kf, (B, F, 3), 0, V).astype(jnp.int32)  # (B,F,3)

    frags = mesh_renderer_scannet(verts, faces, image_size=IMG)
    frags = jax.tree_util.tree_map(jax.block_until_ready, frags)

    assert frags["pix_to_face"].shape == (B, IMG, IMG, 1)
    assert frags["zbuf"].shape == (B, IMG, IMG, 1)
    assert frags["bary_coords"].shape == (B, IMG, IMG, 1, 3)
    assert frags["dists"].shape == (B, IMG, IMG, 1)
    # Light sanity checks.
    p2f_vals = frags["pix_to_face"]
    assert bool(jnp.all((p2f_vals >= -1) & (p2f_vals < B * F)))
    for name in ("zbuf", "bary_coords", "dists"):
        assert bool(jnp.all(jnp.isfinite(frags[name])))
    print("KERNEL_OK")
</pallas_src>

<mosaic_0001>
module attributes {stable_mosaic.version = 11 : i64} {
  func.func @_rasterize_kernel(%arg0: i32, %arg1: i32, %arg2: i32, %arg3: memref<2xi32, #tpu.memory_space<smem>>, %arg4: memref<960xf32, #tpu.memory_space<smem>>, %arg5: memref<48xi32, #tpu.memory_space<smem>>, %arg6: memref<1x16x128xi32, #tpu.memory_space<vmem>>, %arg7: memref<1x16x128xf32, #tpu.memory_space<vmem>>, %arg8: memref<1x3x16x128xf32, #tpu.memory_space<vmem>>, %arg9: memref<1x16x128xf32, #tpu.memory_space<vmem>>) attributes {dimension_semantics = [#tpu.dimension_semantics<parallel>, #tpu.dimension_semantics<parallel>, #tpu.dimension_semantics<parallel>], iteration_bounds = array<i64: 2, 1, 1>, scalar_prefetch = 1 : i64, scratch_operands = 0 : i64, tpu.core_type = #tpu.core_type<tc>, window_params = [{transform_indices = @transform_0, window_bounds = array<i64: 960>}, {transform_indices = @transform_1, window_bounds = array<i64: 48>}, {transform_indices = @transform_2, window_bounds = array<i64: 1, 16, 128>}, {transform_indices = @transform_3, window_bounds = array<i64: 1, 16, 128>}, {transform_indices = @transform_4, window_bounds = array<i64: 1, 3, 16, 128>}, {transform_indices = @transform_5, window_bounds = array<i64: 1, 16, 128>}]} {
    %0 = tpu.iota {dimensions = array<i32: 0>} : vector<16x128xi32>
    %1 = arith.sitofp %0 : vector<16x128xi32> to vector<16x128xf32>
    %2 = tpu.iota {dimensions = array<i32: 1>} : vector<16x128xi32>
    %3 = arith.sitofp %2 : vector<16x128xi32> to vector<16x128xf32>
    %c16_i32 = arith.constant 16 : i32
    %4 = arith.muli %arg1, %c16_i32 : i32
    %5 = arith.sitofp %4 : i32 to f32
    %6 = vector.broadcast %5 : f32 to vector<16x128xf32>
    %7 = arith.addf %6, %1 : vector<16x128xf32>
    %c128_i32 = arith.constant 128 : i32
    %8 = arith.muli %arg2, %c128_i32 : i32
    %9 = arith.sitofp %8 : i32 to f32
    %10 = vector.broadcast %9 : f32 to vector<16x128xf32>
    %11 = arith.addf %10, %3 : vector<16x128xf32>
    %cst = arith.constant 5.000000e-01 : f32
    %12 = vector.broadcast %cst : f32 to vector<16x128xf32>
    %13 = arith.addf %11, %12 : vector<16x128xf32>
    %cst_0 = arith.constant 1.250000e-01 : f32
    %14 = vector.broadcast %cst_0 : f32 to vector<16x128xf32>
    %15 = arith.mulf %14, %13 : vector<16x128xf32>
    %cst_1 = arith.constant 1.000000e+00 : f32
    %16 = vector.broadcast %cst_1 : f32 to vector<16x128xf32>
    %17 = arith.subf %16, %15 : vector<16x128xf32>
    %cst_2 = arith.constant 5.000000e-01 : f32
    %18 = vector.broadcast %cst_2 : f32 to vector<16x128xf32>
    %19 = arith.addf %7, %18 : vector<16x128xf32>
    %cst_3 = arith.constant 1.250000e-01 : f32
    %20 = vector.broadcast %cst_3 : f32 to vector<16x128xf32>
    %21 = arith.mulf %20, %19 : vector<16x128xf32>
    %cst_4 = arith.constant 1.000000e+00 : f32
    %22 = vector.broadcast %cst_4 : f32 to vector<16x128xf32>
    %23 = arith.subf %22, %21 : vector<16x128xf32>
    %c24_i32 = arith.constant 24 : i32
    %24 = arith.muli %arg0, %c24_i32 : i32
    %25 = arith.index_cast %arg0 : i32 to index
    %26 = memref.load %arg3[%25] : memref<2xi32, #tpu.memory_space<smem>>
    %cst_5 = arith.constant 1.000000e+30 : f32
    %27 = vector.broadcast %cst_5 : f32 to vector<16x128xf32>
    %c-1_i32 = arith.constant -1 : i32
    %28 = vector.broadcast %c-1_i32 : i32 to vector<16x128xi32>
    %cst_6 = arith.constant -1.000000e+00 : f32
    %29 = vector.broadcast %cst_6 : f32 to vector<16x128xf32>
    %cst_7 = arith.constant -1.000000e+00 : f32
    %30 = vector.broadcast %cst_7 : f32 to vector<16x128xf32>
    %cst_8 = arith.constant -1.000000e+00 : f32
    %31 = vector.broadcast %cst_8 : f32 to vector<16x128xf32>
    %c0_i32 = arith.constant 0 : i32
    %32 = arith.subi %26, %c0_i32 : i32
    %33 = arith.addi %c0_i32, %32 : i32
    %c1_i32 = arith.constant 1 : i32
    %34:5 = scf.for %arg10 = %c0_i32 to %33 step %c1_i32 iter_args(%arg11 = %27, %arg12 = %28, %arg13 = %29, %arg14 = %30, %arg15 = %31) -> (vector<16x128xf32>, vector<16x128xi32>, vector<16x128xf32>, vector<16x128xf32>, vector<16x128xf32>)  : i32 {
      %62 = arith.addi %24, %arg10 : i32
      %c20_i32 = arith.constant 20 : i32
      %63 = arith.muli %62, %c20_i32 : i32
      %c0_i32_31 = arith.constant 0 : i32
      %64 = arith.addi %63, %c0_i32_31 : i32
      %65 = arith.index_cast %64 : i32 to index
      %66 = memref.load %arg4[%65] : memref<960xf32, #tpu.memory_space<smem>>
      %c1_i32_32 = arith.constant 1 : i32
      %67 = arith.addi %63, %c1_i32_32 : i32
      %68 = arith.index_cast %67 : i32 to index
      %69 = memref.load %arg4[%68] : memref<960xf32, #tpu.memory_space<smem>>
      %c2_i32 = arith.constant 2 : i32
      %70 = arith.addi %63, %c2_i32 : i32
      %71 = arith.index_cast %70 : i32 to index
      %72 = memref.load %arg4[%71] : memref<960xf32, #tpu.memory_space<smem>>
      %c3_i32 = arith.constant 3 : i32
      %73 = arith.addi %63, %c3_i32 : i32
      %74 = arith.index_cast %73 : i32 to index
      %75 = memref.load %arg4[%74] : memref<960xf32, #tpu.memory_space<smem>>
      %c4_i32 = arith.constant 4 : i32
      %76 = arith.addi %63, %c4_i32 : i32
      %77 = arith.index_cast %76 : i32 to index
      %78 = memref.load %arg4[%77] : memref<960xf32, #tpu.memory_space<smem>>
      %c5_i32 = arith.constant 5 : i32
      %79 = arith.addi %63, %c5_i32 : i32
      %80 = arith.index_cast %79 : i32 to index
      %81 = memref.load %arg4[%80] : memref<960xf32, #tpu.memory_space<smem>>
      %c6_i32 = arith.constant 6 : i32
      %82 = arith.addi %63, %c6_i32 : i32
      %83 = arith.index_cast %82 : i32 to index
      %84 = memref.load %arg4[%83] : memref<960xf32, #tpu.memory_space<smem>>
      %c7_i32 = arith.constant 7 : i32
      %85 = arith.addi %63, %c7_i32 : i32
      %86 = arith.index_cast %85 : i32 to index
      %87 = memref.load %arg4[%86] : memref<960xf32, #tpu.memory_space<smem>>
      %c8_i32 = arith.constant 8 : i32
      %88 = arith.addi %63, %c8_i32 : i32
      %89 = arith.index_cast %88 : i32 to index
      %90 = memref.load %arg4[%89] : memref<960xf32, #tpu.memory_space<smem>>
      %c9_i32 = arith.constant 9 : i32
      %91 = arith.addi %63, %c9_i32 : i32
      %92 = arith.index_cast %91 : i32 to index
      %93 = memref.load %arg4[%92] : memref<960xf32, #tpu.memory_space<smem>>
      %c10_i32 = arith.constant 10 : i32
      %94 = arith.addi %63, %c10_i32 : i32
      %95 = arith.index_cast %94 : i32 to index
      %96 = memref.load %arg4[%95] : memref<960xf32, #tpu.memory_space<smem>>
      %c11_i32 = arith.constant 11 : i32
      %97 = arith.addi %63, %c11_i32 : i32
      %98 = arith.index_cast %97 : i32 to index
      %99 = memref.load %arg4[%98] : memref<960xf32, #tpu.memory_space<smem>>
      %c12_i32 = arith.constant 12 : i32
      %100 = arith.addi %63, %c12_i32 : i32
      %101 = arith.index_cast %100 : i32 to index
      %102 = memref.load %arg4[%101] : memref<960xf32, #tpu.memory_space<smem>>
      %c13_i32 = arith.constant 13 : i32
      %103 = arith.addi %63, %c13_i32 : i32
      %104 = arith.index_cast %103 : i32 to index
      %105 = memref.load %arg4[%104] : memref<960xf32, #tpu.memory_space<smem>>
      %c14_i32 = arith.constant 14 : i32
      %106 = arith.addi %63, %c14_i32 : i32
      %107 = arith.index_cast %106 : i32 to index
      %108 = memref.load %arg4[%107] : memref<960xf32, #tpu.memory_space<smem>>
      %c15_i32 = arith.constant 15 : i32
      %109 = arith.addi %63, %c15_i32 : i32
      %110 = arith.index_cast %109 : i32 to index
      %111 = memref.load %arg4[%110] : memref<960xf32, #tpu.memory_space<smem>>
      %c16_i32_33 = arith.constant 16 : i32
      %112 = arith.addi %63, %c16_i32_33 : i32
      %113 = arith.index_cast %112 : i32 to index
      %114 = memref.load %arg4[%113] : memref<960xf32, #tpu.memory_space<smem>>
      %c17_i32 = arith.constant 17 : i32
      %115 = arith.addi %63, %c17_i32 : i32
      %116 = arith.index_cast %115 : i32 to index
      %117 = memref.load %arg4[%116] : memref<960xf32, #tpu.memory_space<smem>>
      %c18_i32 = arith.constant 18 : i32
      %118 = arith.addi %63, %c18_i32 : i32
      %119 = arith.index_cast %118 : i32 to index
      %120 = memref.load %arg4[%119] : memref<960xf32, #tpu.memory_space<smem>>
      %121 = arith.addi %24, %arg10 : i32
      %122 = arith.index_cast %121 : i32 to index
      %123 = memref.load %arg5[%122] : memref<48xi32, #tpu.memory_space<smem>>
      %124 = vector.broadcast %66 : f32 to vector<16x128xf32>
      %125 = arith.subf %17, %124 : vector<16x128xf32>
      %126 = vector.broadcast %69 : f32 to vector<16x128xf32>
      %127 = arith.subf %23, %126 : vector<16x128xf32>
      %128 = vector.broadcast %75 : f32 to vector<16x128xf32>
      %129 = arith.subf %17, %128 : vector<16x128xf32>
      %130 = vector.broadcast %78 : f32 to vector<16x128xf32>
      %131 = arith.subf %23, %130 : vector<16x128xf32>
      %132 = vector.broadcast %84 : f32 to vector<16x128xf32>
      %133 = arith.subf %17, %132 : vector<16x128xf32>
      %134 = vector.broadcast %87 : f32 to vector<16x128xf32>
      %135 = arith.subf %23, %134 : vector<16x128xf32>
      %136 = vector.broadcast %99 : f32 to vector<16x128xf32>
      %137 = arith.mulf %136, %131 : vector<16x128xf32>
      %138 = vector.broadcast %102 : f32 to vector<16x128xf32>
      %139 = arith.mulf %138, %129 : vector<16x128xf32>
      %140 = arith.subf %137, %139 : vector<16x128xf32>
      %141 = vector.broadcast %111 : f32 to vector<16x128xf32>
      %142 = arith.mulf %140, %141 : vector<16x128xf32>
      %143 = vector.broadcast %105 : f32 to vector<16x128xf32>
      %144 = arith.mulf %143, %135 : vector<16x128xf32>
      %145 = vector.broadcast %108 : f32 to vector<16x128xf32>
      %146 = arith.mulf %145, %133 : vector<16x128xf32>
      %147 = arith.subf %144, %146 : vector<16x128xf32>
      %148 = vector.broadcast %111 : f32 to vector<16x128xf32>
      %149 = arith.mulf %147, %148 : vector<16x128xf32>
      %150 = vector.broadcast %93 : f32 to vector<16x128xf32>
      %151 = arith.mulf %150, %127 : vector<16x128xf32>
      %152 = vector.broadcast %96 : f32 to vector<16x128xf32>
      %153 = arith.mulf %152, %125 : vector<16x128xf32>
      %154 = arith.subf %151, %153 : vector<16x128xf32>
      %155 = vector.broadcast %111 : f32 to vector<16x128xf32>
      %156 = arith.mulf %154, %155 : vector<16x128xf32>
      %cst_34 = arith.constant 0.000000e+00 : f32
      %157 = vector.broadcast %cst_34 : f32 to vector<16x128xf32>
      %158 = arith.cmpf oge, %142, %157 : vector<16x128xf32>
      %cst_35 = arith.constant 0.000000e+00 : f32
      %159 = vector.broadcast %cst_35 : f32 to vector<16x128xf32>
      %160 = arith.cmpf oge, %149, %159 : vector<16x128xf32>
      %161 = arith.andi %158, %160 : vector<16x128xi1>
      %cst_36 = arith.constant 0.000000e+00 : f32
      %162 = vector.broadcast %cst_36 : f32 to vector<16x128xf32>
      %163 = arith.cmpf oge, %156, %162 : vector<16x128xf32>
      %164 = arith.andi %161, %163 : vector<16x128xi1>
      %165 = vector.broadcast %72 : f32 to vector<16x128xf32>
      %166 = arith.mulf %142, %165 : vector<16x128xf32>
      %167 = vector.broadcast %81 : f32 to vector<16x128xf32>
      %168 = arith.mulf %149, %167 : vector<16x128xf32>
      %169 = arith.addf %166, %168 : vector<16x128xf32>
      %170 = vector.broadcast %90 : f32 to vector<16x128xf32>
      %171 = arith.mulf %156, %170 : vector<16x128xf32>
      %172 = arith.addf %169, %171 : vector<16x128xf32>
      %cst_37 = arith.constant 0.000000e+00 : f32
      %173 = vector.broadcast %cst_37 : f32 to vector<16x128xf32>
      %174 = arith.cmpf ogt, %172, %173 : vector<16x128xf32>
      %175 = arith.andi %164, %174 : vector<16x128xi1>
      %176 = vector.broadcast %93 : f32 to vector<16x128xf32>
      %177 = arith.mulf %125, %176 : vector<16x128xf32>
      %178 = vector.broadcast %96 : f32 to vector<16x128xf32>
      %179 = arith.mulf %127, %178 : vector<16x128xf32>
      %180 = arith.addf %177, %179 : vector<16x128xf32>
      %181 = vector.broadcast %114 : f32 to vector<16x128xf32>
      %182 = arith.mulf %180, %181 : vector<16x128xf32>
      %cst_38 = arith.constant 0.000000e+00 : f32
      %cst_39 = arith.constant 1.000000e+00 : f32
      %183 = vector.broadcast %cst_38 : f32 to vector<16x128xf32>
      %184 = arith.maximumf %183, %182 : vector<16x128xf32>
      %185 = vector.broadcast %cst_39 : f32 to vector<16x128xf32>
      %186 = arith.minimumf %185, %184 : vector<16x128xf32>
      %187 = vector.broadcast %93 : f32 to vector<16x128xf32>
      %188 = arith.mulf %186, %187 : vector<16x128xf32>
      %189 = arith.subf %125, %188 : vector<16x128xf32>
      %190 = vector.broadcast %96 : f32 to vector<16x128xf32>
      %191 = arith.mulf %186, %190 : vector<16x128xf32>
      %192 = arith.subf %127, %191 : vector<16x128xf32>
      %193 = arith.mulf %189, %189 : vector<16x128xf32>
      %194 = arith.mulf %192, %192 : vector<16x128xf32>
      %195 = arith.addf %193, %194 : vector<16x128xf32>
      %196 = vector.broadcast %99 : f32 to vector<16x128xf32>
      %197 = arith.mulf %129, %196 : vector<16x128xf32>
      %198 = vector.broadcast %102 : f32 to vector<16x128xf32>
      %199 = arith.mulf %131, %198 : vector<16x128xf32>
      %200 = arith.addf %197, %199 : vector<16x128xf32>
      %201 = vector.broadcast %117 : f32 to vector<16x128xf32>
      %202 = arith.mulf %200, %201 : vector<16x128xf32>
      %cst_40 = arith.constant 0.000000e+00 : f32
      %cst_41 = arith.constant 1.000000e+00 : f32
      %203 = vector.broadcast %cst_40 : f32 to vector<16x128xf32>
      %204 = arith.maximumf %203, %202 : vector<16x128xf32>
      %205 = vector.broadcast %cst_41 : f32 to vector<16x128xf32>
      %206 = arith.minimumf %205, %204 : vector<16x128xf32>
      %207 = vector.broadcast %99 : f32 to vector<16x128xf32>
      %208 = arith.mulf %206, %207 : vector<16x128xf32>
      %209 = arith.subf %129, %208 : vector<16x128xf32>
      %210 = vector.broadcast %102 : f32 to vector<16x128xf32>
      %211 = arith.mulf %206, %210 : vector<16x128xf32>
      %212 = arith.subf %131, %211 : vector<16x128xf32>
      %213 = arith.mulf %209, %209 : vector<16x128xf32>
      %214 = arith.mulf %212, %212 : vector<16x128xf32>
      %215 = arith.addf %213, %214 : vector<16x128xf32>
      %216 = vector.broadcast %105 : f32 to vector<16x128xf32>
      %217 = arith.mulf %133, %216 : vector<16x128xf32>
      %218 = vector.broadcast %108 : f32 to vector<16x128xf32>
      %219 = arith.mulf %135, %218 : vector<16x128xf32>
      %220 = arith.addf %217, %219 : vector<16x128xf32>
      %221 = vector.broadcast %120 : f32 to vector<16x128xf32>
      %222 = arith.mulf %220, %221 : vector<16x128xf32>
      %cst_42 = arith.constant 0.000000e+00 : f32
      %cst_43 = arith.constant 1.000000e+00 : f32
      %223 = vector.broadcast %cst_42 : f32 to vector<16x128xf32>
      %224 = arith.maximumf %223, %222 : vector<16x128xf32>
      %225 = vector.broadcast %cst_43 : f32 to vector<16x128xf32>
      %226 = arith.minimumf %225, %224 : vector<16x128xf32>
      %227 = vector.broadcast %105 : f32 to vector<16x128xf32>
      %228 = arith.mulf %226, %227 : vector<16x128xf32>
      %229 = arith.subf %133, %228 : vector<16x128xf32>
      %230 = vector.broadcast %108 : f32 to vector<16x128xf32>
      %231 = arith.mulf %226, %230 : vector<16x128xf32>
      %232 = arith.subf %135, %231 : vector<16x128xf32>
      %233 = arith.mulf %229, %229 : vector<16x128xf32>
      %234 = arith.mulf %232, %232 : vector<16x128xf32>
      %235 = arith.addf %233, %234 : vector<16x128xf32>
      %236 = arith.minimumf %215, %235 : vector<16x128xf32>
      %237 = arith.minimumf %195, %236 : vector<16x128xf32>
      %cst_44 = arith.constant 0.000000e+00 : f32
      %238 = vector.broadcast %cst_44 : f32 to vector<16x128xf32>
      %239 = arith.subf %238, %237 : vector<16x128xf32>
      %240 = arith.select %164, %239, %237 : vector<16x128xi1>, vector<16x128xf32>
      %241 = arith.cmpf olt, %172, %arg11 : vector<16x128xf32>
      %242 = arith.andi %175, %241 : vector<16x128xi1>
      %243 = arith.select %242, %172, %arg11 : vector<16x128xi1>, vector<16x128xf32>
      %244 = vector.broadcast %123 : i32 to vector<16x128xi32>
      %245 = arith.select %242, %244, %arg12 : vector<16x128xi1>, vector<16x128xi32>
      %246 = arith.select %242, %142, %arg13 : vector<16x128xi1>, vector<16x128xf32>
      %247 = arith.select %242, %149, %arg14 : vector<16x128xi1>, vector<16x128xf32>
      %248 = arith.select %242, %240, %arg15 : vector<16x128xi1>, vector<16x128xf32>
      scf.yield %243, %245, %246, %247, %248 : vector<16x128xf32>, vector<16x128xi32>, vector<16x128xf32>, vector<16x128xf32>, vector<16x128xf32>
    }
    %c0_i32_9 = arith.constant 0 : i32
    %35 = vector.broadcast %c0_i32_9 : i32 to vector<16x128xi32>
    %36 = arith.cmpi sge, %34#1, %35 : vector<16x128xi32>
    %c0 = arith.constant 0 : index
    %c0_10 = arith.constant 0 : index
    %c0_11 = arith.constant 0 : index
    %37 = vector.load %arg6[%c0, %c0_10, %c0_11] : memref<1x16x128xi32, #tpu.memory_space<vmem>>, vector<1x16x128xi32>
    %38 = vector.shape_cast %37 : vector<1x16x128xi32> to vector<16x128xi32>
    %39 = vector.shape_cast %34#1 : vector<16x128xi32> to vector<1x16x128xi32>
    tpu.vector_store %arg6[%c0, %c0_10, %c0_11], %39 {strides = array<i32>} : memref<1x16x128xi32, #tpu.memory_space<vmem>>, vector<1x16x128xi32>,
    %cst_12 = arith.constant -1.000000e+00 : f32
    %40 = vector.broadcast %cst_12 : f32 to vector<16x128xf32>
    %41 = arith.select %36, %34#0, %40 : vector<16x128xi1>, vector<16x128xf32>
    %c0_13 = arith.constant 0 : index
    %c0_14 = arith.constant 0 : index
    %c0_15 = arith.constant 0 : index
    %42 = vector.load %arg7[%c0_13, %c0_14, %c0_15] : memref<1x16x128xf32, #tpu.memory_space<vmem>>, vector<1x16x128xf32>
    %43 = vector.shape_cast %42 : vector<1x16x128xf32> to vector<16x128xf32>
    %44 = vector.shape_cast %41 : vector<16x128xf32> to vector<1x16x128xf32>
    tpu.vector_store %arg7[%c0_13, %c0_14, %c0_15], %44 {strides = array<i32>} : memref<1x16x128xf32, #tpu.memory_space<vmem>>, vector<1x16x128xf32>,
    %c0_16 = arith.constant 0 : index
    %c0_17 = arith.constant 0 : index
    %c0_18 = arith.constant 0 : index
    %c0_19 = arith.constant 0 : index
    %45 = vector.load %arg8[%c0_16, %c0_17, %c0_18, %c0_19] : memref<1x3x16x128xf32, #tpu.memory_space<vmem>>, vector<1x1x16x128xf32>
    %46 = vector.shape_cast %45 : vector<1x1x16x128xf32> to vector<16x128xf32>
    %47 = vector.shape_cast %34#2 : vector<16x128xf32> to vector<1x1x16x128xf32>
    tpu.vector_store %arg8[%c0_16, %c0_17, %c0_18, %c0_19], %47 {strides = array<i32>} : memref<1x3x16x128xf32, #tpu.memory_space<vmem>>, vector<1x1x16x128xf32>,
    %c0_20 = arith.constant 0 : index
    %c1 = arith.constant 1 : index
    %c0_21 = arith.constant 0 : index
    %c0_22 = arith.constant 0 : index
    %48 = vector.load %arg8[%c0_20, %c1, %c0_21, %c0_22] : memref<1x3x16x128xf32, #tpu.memory_space<vmem>>, vector<1x1x16x128xf32>
    %49 = vector.shape_cast %48 : vector<1x1x16x128xf32> to vector<16x128xf32>
    %50 = vector.shape_cast %34#3 : vector<16x128xf32> to vector<1x1x16x128xf32>
    tpu.vector_store %arg8[%c0_20, %c1, %c0_21, %c0_22], %50 {strides = array<i32>} : memref<1x3x16x128xf32, #tpu.memory_space<vmem>>, vector<1x1x16x128xf32>,
    %cst_23 = arith.constant 1.000000e+00 : f32
    %51 = vector.broadcast %cst_23 : f32 to vector<16x128xf32>
    %52 = arith.subf %51, %34#2 : vector<16x128xf32>
    %53 = arith.subf %52, %34#3 : vector<16x128xf32>
    %cst_24 = arith.constant -1.000000e+00 : f32
    %54 = vector.broadcast %cst_24 : f32 to vector<16x128xf32>
    %55 = arith.select %36, %53, %54 : vector<16x128xi1>, vector<16x128xf32>
    %c0_25 = arith.constant 0 : index
    %c2 = arith.constant 2 : index
    %c0_26 = arith.constant 0 : index
    %c0_27 = arith.constant 0 : index
    %56 = vector.load %arg8[%c0_25, %c2, %c0_26, %c0_27] : memref<1x3x16x128xf32, #tpu.memory_space<vmem>>, vector<1x1x16x128xf32>
    %57 = vector.shape_cast %56 : vector<1x1x16x128xf32> to vector<16x128xf32>
    %58 = vector.shape_cast %55 : vector<16x128xf32> to vector<1x1x16x128xf32>
    tpu.vector_store %arg8[%c0_25, %c2, %c0_26, %c0_27], %58 {strides = array<i32>} : memref<1x3x16x128xf32, #tpu.memory_space<vmem>>, vector<1x1x16x128xf32>,
    %c0_28 = arith.constant 0 : index
    %c0_29 = arith.constant 0 : index
    %c0_30 = arith.constant 0 : index
    %59 = vector.load %arg9[%c0_28, %c0_29, %c0_30] : memref<1x16x128xf32, #tpu.memory_space<vmem>>, vector<1x16x128xf32>
    %60 = vector.shape_cast %59 : vector<1x16x128xf32> to vector<16x128xf32>
    %61 = vector.shape_cast %34#4 : vector<16x128xf32> to vector<1x16x128xf32>
    tpu.vector_store %arg9[%c0_28, %c0_29, %c0_30], %61 {strides = array<i32>} : memref<1x16x128xf32, #tpu.memory_space<vmem>>, vector<1x16x128xf32>,
    return
  }
  func.func @transform_0(%arg0: i32, %arg1: i32, %arg2: i32, %arg3: memref<2xi32, #tpu.memory_space<smem>>) -> i32 {
    %c0_i32 = arith.constant 0 : i32
    %c0_i32_0 = arith.constant 0 : i32
    return %c0_i32 : i32
  }
  func.func @transform_1(%arg0: i32, %arg1: i32, %arg2: i32, %arg3: memref<2xi32, #tpu.memory_space<smem>>) -> i32 {
    %c0_i32 = arith.constant 0 : i32
    %c0_i32_0 = arith.constant 0 : i32
    return %c0_i32 : i32
  }
  func.func @transform_2(%arg0: i32, %arg1: i32, %arg2: i32, %arg3: memref<2xi32, #tpu.memory_space<smem>>) -> (i32, i32, i32) {
    %c0_i32 = arith.constant 0 : i32
    return %arg0, %arg1, %arg2 : i32, i32, i32
  }
  func.func @transform_3(%arg0: i32, %arg1: i32, %arg2: i32, %arg3: memref<2xi32, #tpu.memory_space<smem>>) -> (i32, i32, i32) {
    %c0_i32 = arith.constant 0 : i32
    return %arg0, %arg1, %arg2 : i32, i32, i32
  }
  func.func @transform_4(%arg0: i32, %arg1: i32, %arg2: i32, %arg3: memref<2xi32, #tpu.memory_space<smem>>) -> (i32, i32, i32, i32) {
    %c0_i32 = arith.constant 0 : i32
    %c0_i32_0 = arith.constant 0 : i32
    return %arg0, %c0_i32, %arg1, %arg2 : i32, i32, i32, i32
  }
  func.func @transform_5(%arg0: i32, %arg1: i32, %arg2: i32, %arg3: memref<2xi32, #tpu.memory_space<smem>>) -> (i32, i32, i32) {
    %c0_i32 = arith.constant 0 : i32
    return %arg0, %arg1, %arg2 : i32, i32, i32
  }
}

</mosaic_0001>

<bundles_post_ra>
// kernel: tpu_custom_call.1
= control target key start
LH: loop header
LB: loop body
LE: loop exit
PB: predicated region body
PF: predicated region fallthrough
CT: control target
= control target key end

     0   :  { %s2367_s0 = inlined_call_operand.hbm [shape: s32[2], index: 0, kind: input, shape index: {}]   ;;  %s2368_s1 = inlined_call_operand.hbm [shape: f32[960], index: 1, kind: input, shape index: {}]   ;;  %s2369_s2 = inlined_call_operand.vmem [shape: s32[48], index: 2, kind: input, shape index: {}]   ;;  %s2370_s3 = inlined_call_operand.hbm [shape: s32[2,16,128], index: 3, kind: output, shape index: {0}]   ;;  %s2371_s4 = inlined_call_operand.hbm [shape: f32[2,16,128], index: 4, kind: output, shape index: {1}]   ;;  %s2372_s5 = inlined_call_operand.hbm [shape: f32[2,3,16,128], index: 5, kind: output, shape index: {2}]   ;;  %s2373_s6 = inlined_call_operand.hbm [shape: f32[2,16,128], index: 6, kind: output, shape index: {3}]  }
   0x1   :  { %2386 = sst [smem:[#allocation29_spill]] %s2368_s1  ;;  %s1192_s23 = scalar_lea.hbm %s2367_s0, 16 }
   0x2   :  { %2387 = sst [smem:[#allocation30_spill]] %s2369_s2  ;;  %p1193_p0 = scmp.ne.s32.totalorder %s2367_s0, %s1192_s23 }
   0x3   :  { %2388 = sst [smem:[#allocation31_spill]] %s2372_s5  ;;  %p1196_p1 = scmp.lt.u32.totalorder %s1192_s23, %s2367_s0 }
   0x4   :  { %2389 = sst [smem:[#allocation32_spill]] %s2373_s6 }
   0x5   :  { %p1198_p2 = pnand %p1196_p1, %p1193_p0 }
   0x7   :  { %1201 = shalt.err (!%p1198_p2)  }
   0x8   :  { %s1580_s28 = smov [#allocation3]  }
   0x9   :  { %13 = dma.hbm_to_smem %s2367_s0, 16, %s1580_s28, [#allocation2] }
   0xa   :  { %1450 = dma.done.wait [#allocation2], 16 }
   0xb   :  { %1451 = vsyncadd [#allocation2], 4294967280 }
   0xc   :  { %15 = sfence }
   0xd   :  { %16 = vsyncpa [#allocation6], 0 }
   0xe   :  { %17 = vsyncpa [#allocation7], 0 }
   0xf   :  { %18 = vsyncpa [#allocation5], 0 }
  0x10   :  { %20 = vsyncpa [#allocation5 + $0x1], 0 }
  0x11   :  { %21 = vsyncpa [#allocation11], 0 }
  0x12   :  { %23 = vsyncpa [#allocation11 + $0x1], 0 }
  0x13   :  { %24 = vsyncpa [#allocation14], 0 }
  0x14   :  { %26 = vsyncpa [#allocation14 + $0x1], 0  ;;  %s1636_s7 = smov 0   ;;  %s1638_s8 = smov 0  }
  0x15   :  { %s1640_s9 = smov 0   ;;  %s1642_s10 = smov 0  }
  0x16   :  { %s1644_s0 = smov 0   ;;  %s1646_s11 = smov 0  }
  0x17 LB: > { %2390 = sst [smem:[#allocation21_spill]] %s1474_s7  ;;  %s1667_s12 = sadd.s32 4294967295, %s1494_s11   ;;  %s1494_s11 = sphi %s1646_s11, %s32_s11   ;;  %s1490_s0 = sphi %s1644_s0, %s2453_s0   ;;  %s1486_s10 = sphi %s1642_s10, %s2452_s10   ;;  %s1482_s9 = sphi %s1640_s9, %s2451_s9   ;;  %s1478_s8 = sphi %s1638_s8, %s2450_s8   ;;  %s1474_s7 = sphi %s1636_s7, %s2449_s7  }
  0x18   : > { %2391 = sst [smem:[#allocation22_spill]] %s1478_s8  ;;  %s2375_s13 = sadd.s32 4294967294, %s1494_s11  }
  0x19   : > { %2392 = sst [smem:[#allocation23_spill]] %s1482_s9  ;;  %s51_s14 = sadd.s32 1, %s1490_s0 }
  0x1a   : > { %2393 = sst [smem:[#allocation24_spill]] %s1490_s0  ;;  %s104_s15 = sadd.s32 1, %s1482_s9 }
  0x1b   : > { %2394 = sst [smem:[#allocation25_spill]] %s1494_s11  ;;  %p53_p3 = scmp.ge.s32.totalorder %s51_s14, 2 }
  0x1c   : > { %p114_p4 = scmp.ne.s32.totalorder %s1482_s9, %s1478_s8  ;;  %p115_p5 = scmp.eq.s32.totalorder %s1667_s12, 1 }
  0x1d   : > { %p120_p6 = scmp.ne.s32.totalorder %s1478_s8, %s1474_s7  ;;  %s2455_s14 = smov (%p53_p3, %s51_s14), 0 }
  0x1e   : > { %2395 = sst [smem:[#allocation26_spill]] %s2455_s14  ;;  %p1679_p7 = por %p115_p5, %p114_p4 }
  0x1f   : > { %p121_p8 = scmp.eq.s32.totalorder %s2375_s13, 1  ;;  %s97_s17 = ssub.s32 %s1490_s0, %s2455_s14 }
  0x20   : > { %p899_p9 = scmp.ge.s32.totalorder %s1494_s11, 1  ;;  %p102_p10 = scmp.eq.s32.totalorder %s97_s17, 0 }
  0x21   : > { %p1688_p11 = por %p121_p8, %p120_p6  ;;  %p218_p12 = scmp.lt.s32.totalorder %s1494_s11, 3 }
  0x22   : > { %s1694_s19 = scalar_select %p102_p10, %s1482_s9, %s104_s15  }
  0x23   : > { %s2397_s18 = scalar_select %p1688_p11, 1, 0 }
  0x24   : > { %2399 = sst [smem:[#allocation28_spill]] %s1694_s19  ;;  %p1696_p13 = pnand %p899_p9, %p218_p12 }
  0x25   : > { %2398 = sst [smem:[#allocation27_spill]] %s2397_s18  ;;  %p2374_p0 = scmp.eq.s32.totalorder %s1667_s12, 0 }
  0x26   : > { %p946_p1 = pneg %p1696_p13  ;;  %s2401_s2 = sld [smem:[#allocation30_spill]] }
  0x27   : > { %s2403_s1 = sld [smem:[#allocation29_spill]] }
  0x28   : > { %p1708_p2 = pnand %p2374_p0, %p946_p1 }
  0x2a   : > { %p1204_p4 = pneg %p1708_p2 }
  0x2c   : > { %s240_s23 = sshll.u32 %s2401_s2, 4  ;;  %s241_s23 = int_to_ptr.vmem [resolvable:$true] %s240_s23 }
  0x2d   : > { %s1202_s27 = scalar_lea.hbm %s2403_s1, 128 }
  0x2e   : > { %p1203_p3 = scmp.ne.s32.totalorder %s2403_s1, %s1202_s27  ;;  %p1209_p8 = scmp.lt.u32.totalorder %s1202_s27, %s2403_s1 }
  0x30   : > { %p1205_p5 = pnand %p1204_p4, %p1203_p3 }
  0x32   : > { %p1206_p6 = pneg %p1205_p5 }
  0x34   : > { %p1211_p9 = pnand %p1209_p8, %p1206_p6 }
  0x36   : > { %1214 = shalt.err (!%p1211_p9)
}
  0x37   : > { %s1581_s17 = smov [#allocation4]   ;;  %s1215_s25 = scalar_lea.vmem %s241_s23, 16 }
  0x38   : > { %949 = dma.hbm_to_smem (!%p1708_p2), %s2403_s1, 128, %s1581_s17, [#allocation6]  }
  0x39   : > { %p1216_p10 = scmp.ne.s32.totalorder %s241_s23, %s1215_s25  ;;  %p1223_p0 = scmp.lt.s32.totalorder %s241_s23, %s241_s23 }
  0x3a   : > { %p1224_p3 = scmp.lt.s32.totalorder %s1215_s25, %s1215_s25 }
  0x3b   : > { %p1218_p12 = pnand %p1216_p10, %p1204_p4 }
  0x3c   : > { %p1225_p5 = por %p1224_p3, %p1223_p0 }
  0x3d   : > { %p1219_p1 = pneg %p1218_p12 }
  0x3f   : > { %p1226_p11 = pnand %p1225_p5, %p1219_p1 }
  0x41   : > { %1229 = shalt.err (!%p1226_p11)
}
  0x42   : > { %s1582_s26 = smov [#allocation8]   ;;  %253 = sbr.rel (%p1696_p13) target bundleno = 259 (0x103), region = 28 }
  0x43   : > { %952 = dma.vmem_to_smem (!%p1708_p2), %s241_s23, 16, %s1582_s26, [#allocation7]  }
  0x44   : > { %p2404_p6 = scmp.eq.s32.totalorder (!%p1696_p13), %s1667_s12, 0 }
  0x49   : > { %1453 = dma.done.wait (%p2404_p6), [#allocation6], 128   ;;  %p2405_p8 = pmov %p2404_p6 }
  0x4a   : > { %p2406_p4 = pmov %p2404_p6 }
  0x4b   : > { %1455 = vsyncadd (%p2405_p8), [#allocation6], 4294967168 }
  0x4c   : > { %1457 = dma.done.wait (%p2406_p4), [#allocation7], 16   ;;  %p2407_p0 = pmov %p2406_p4 }
  0x4e   : > { %1459 = vsyncadd (%p2407_p0), [#allocation7], 4294967280 }
  0x4f   : > { %263 = sfence }
  0x50   : > { %s1741_s23 = sand.u32 1, %s1478_s8   ;;  %v300_v0 = vlaneseq  ;;  %s1747_s28 = sld [smem:[#allocation3 + %s1486_s10]]  ;;  %v1764_v16 = vmov -1.0   ;;  %v1766_v17 = vmov -1.0   ;;  %v1768_v18 = vmov -1.0  }
  0x51   : > { %s905_s24 = sshll.u32 %s1741_s23, 4  ;;  %s928_s27 = smul.u32 48, %s1741_s23  ;;  %v1770_v19 = vmov -1.0   ;;  %v1772_v20 = vmov -1.0   ;;  %v1774_v21 = vmov -1.0   ;;  %v1776_v22 = vmov 4294967295  }
  0x52   : > { %v301_v1 = vshrl.u32 %v300_v0, 7  ;;  %v306_v2 = vand.u32 127, %v300_v0  ;;  %s1755_s29 = scalar_lea.vmem [#allocation9], %s905_s24  ;;  %s1757_s30 = scalar_lea.vmem [#allocation10], %s905_s24  ;;  %v1778_v23 = vmov 4294967295  }
  0x53   : > { %s1759_s15 = scalar_lea.vmem [#allocation12], %s928_s27  ;;  %s1761_s17 = scalar_lea.vmem [#allocation13], %s905_s24  ;;  %v1780_v24 = vmov 1e+30   ;;  %v1782_v25 = vmov 1e+30  }
  0x54   : > { %v302_v3 = vadd.s32 8, %v301_v1  ;;  %v303_v4 = vcvt.s32.f32 %v301_v1  ;;  %v307_v5 = vcvt.s32.f32 %v306_v2 }
  0x56   : > { %v304_v6 = vcvt.s32.f32 %v302_v3  ;;  %v317_v7 = vadd.f32 0.5, %v307_v5  ;;  %v320_v8 = vadd.f32 0.5, %v303_v4  ;;  %p908_p11 = scmp.le.s32.totalorder %s1747_s28, 0 }
  0x57   : > { %v1784_v26 = vmov (!%p908_p11), -1.0   ;;  %v1786_v27 = vmov (!%p908_p11), -1.0   ;;  %v1788_v28 = vmov (!%p908_p11), -1.0   ;;  %v1790_v29 = vmov (!%p908_p11), -1.0   ;;  %s1804_s21 = smov (!%p908_p11), 0  }
  0x58   : > { %v318_v9 = vmul.f32 0.125, %v317_v7  ;;  %v321_v10 = vadd.f32 0.5, %v304_v6  ;;  %v322_v11 = vmul.f32 0.125, %v320_v8  ;;  %803 = sbr.rel (%p908_p11) target bundleno = 161 (0xa1), region = 122  ;;  %v1792_v30 = vmov (!%p908_p11), -1.0  }
  0x59   : > { %v1794_v31 = vmov (!%p908_p11), -1.0   ;;  %v1796_v32 = vmov (!%p908_p11), 4294967295   ;;  %v1798_v33 = vmov (!%p908_p11), 4294967295   ;;  %v1800_v34 = vmov (!%p908_p11), 1e+30  }
  0x5a   : > { %v1749_v12 = vsub.f32 1.0, %v318_v9  ;;  %v323_v13 = vmul.f32 0.125, %v321_v10  ;;  %v1751_v14 = vsub.f32 1.0, %v322_v11  ;;  %v1802_v35 = vmov (!%p908_p11), 1e+30  }
  0x5c   : > { %v1753_v15 = vsub.f32 1.0, %v323_v13 }
  0x5f LB: >> { %s2408_s20 = smul.u32 24, %s1486_s10  ;;  %s1538_s21 = sphi %s1804_s21, %s331_s21   ;;  %v1534_v35 = vphi %v1802_v35, %v2431_v35   ;;  %v1530_v34 = vphi %v1800_v34, %v2430_v34   ;;  %v1526_v33 = vphi %v1798_v33, %v2429_v33   ;;  %v1522_v32 = vphi %v1796_v32, %v2428_v32   ;;  %v1518_v31 = vphi %v1794_v31, %v2427_v31   ;;  %v1514_v30 = vphi %v1792_v30, %v2426_v30   ;;  %v1510_v29 = vphi %v1790_v29, %v2425_v29   ;;  %v1506_v28 = vphi %v1788_v28, %v2424_v28   ;;  %v1502_v27 = vphi %v1786_v27, %v2423_v27   ;;  %v1498_v26 = vphi %v1784_v26, %v2422_v26  }
  0x61   : >> { %s1842_s22 = sadd.s32 %s1538_s21, %s2408_s20  ;;  %s331_s21 = sadd.s32 1, %s1538_s21  }
  0x62   : >> { %s1845_s25 = smul.u32 20, %s1842_s22  ;;  %p330_p13 = scmp.ge.s32.totalorder %s331_s21, %s1747_s28 }
  0x64   : >> { %s1848_s26 = sld [smem:[#allocation4 + %s1845_s25]]  ;;  %s347_s24 = sadd.s32 1, %s1845_s25 }
  0x65   : >> { %s1851_s27 = sld [smem:[#allocation4 + %s347_s24]]  ;;  %s349_s20 = sadd.s32 2, %s1845_s25 }
  0x66   : >> { %s1854_s13 = sld [smem:[#allocation4 + %s349_s20]]  ;;  %s351_s1 = sadd.s32 3, %s1845_s25 }
  0x67   : >> { %s352_s2 = sld [smem:[#allocation4 + %s351_s1]]  ;;  %s353_s14 = sadd.s32 4, %s1845_s25 }
  0x68   : >> { %s1858_s0 = sld [smem:[#allocation4 + %s353_s14]]  ;;  %s355_s19 = sadd.s32 5, %s1845_s25 }
  0x69   : >> { %s1861_s9 = sld [smem:[#allocation4 + %s355_s19]]  ;;  %s357_s8 = sadd.s32 6, %s1845_s25 }
  0x6a   : >> { %s1864_s24 = sld [smem:[#allocation4 + %s357_s8]]  ;;  %s359_s18 = sadd.s32 7, %s1845_s25  ;;  %v384_v36 = vstv %s1848_s26 }
  0x6b   : >> { %s1867_s20 = sld [smem:[#allocation4 + %s359_s18]]  ;;  %s361_s7 = sadd.s32 8, %s1845_s25  ;;  %v386_v37 = vstv %s1851_s27  ;;  %v1889_v40 = vsub.f32 %v1749_v12, %v384_v36 }
  0x6c   : >> { %s1870_s11 = sld [smem:[#allocation4 + %s361_s7]]  ;;  %s363_s1 = sadd.s32 9, %s1845_s25  ;;  %v1892_v41 = vsub.f32 %v1751_v14, %v386_v37  ;;  %v1899_v43 = vsub.f32 %v1753_v15, %v386_v37  ;;  %v437_v46 = vstv %s1854_s13 }
  0x6d   : >> { %s1873_s6 = sld [smem:[#allocation4 + %s363_s1]]  ;;  %s365_s14 = sadd.s32 10, %s1845_s25  ;;  %v389_v38 = vstv %s352_s2 }
  0x6e   : >> { %s1878_s19 = sld [smem:[#allocation4 + %s365_s14]]  ;;  %s367_s8 = sadd.s32 11, %s1845_s25  ;;  %v391_v39 = vstv %s1858_s0  ;;  %v1902_v44 = vsub.f32 %v1749_v12, %v389_v38 }
  0x6f   : >> { %s1881_s18 = sld [smem:[#allocation4 + %s367_s8]]  ;;  %s369_s5 = sadd.s32 12, %s1845_s25  ;;  %v1910_v47 = vsub.f32 %v1751_v14, %v391_v39  ;;  %v1913_v48 = vsub.f32 %v1753_v15, %v391_v39  ;;  %v440_v50 = vstv %s1861_s9 }
  0x70   : >> { %s1885_s7 = sld [smem:[#allocation4 + %s369_s5]]  ;;  %s371_s1 = sadd.s32 13, %s1845_s25  ;;  %v394_v42 = vstv %s1864_s24 }
  0x71   : >> { %s1895_s26 = sld [smem:[#allocation4 + %s371_s1]]  ;;  %s373_s2 = sadd.s32 14, %s1845_s25  ;;  %v396_v45 = vstv %s1867_s20  ;;  %v1916_v49 = vsub.f32 %v1749_v12, %v394_v42 }
  0x72   : >> { %s1906_s5 = sld [smem:[#allocation4 + %s373_s2]]  ;;  %s375_s0 = sadd.s32 15, %s1845_s25  ;;  %v1923_v51 = vsub.f32 %v1751_v14, %v396_v45  ;;  %v1926_v52 = vsub.f32 %v1753_v15, %v396_v45  ;;  %v445_v54 = vstv %s1870_s11 }
  0x73   : >> { %s1919_s27 = sld [smem:[#allocation4 + %s375_s0]]  ;;  %s377_s24 = sadd.s32 16, %s1845_s25  ;;  %v1929_v53 = vstv %s1873_s6 }
  0x74   : >> { %s1932_s13 = sld [smem:[#allocation4 + %s377_s24]]  ;;  %v419_v55 = vmul.f32 %v1929_v53, %v1892_v41  ;;  %v420_v56 = vmul.f32 %v1929_v53, %v1899_v43  ;;  %v1939_v57 = vstv %s1878_s19  ;;  %v454_v58 = vmul.f32 %v1929_v53, %v1889_v40  ;;  %s379_s6 = sadd.s32 17, %s1845_s25 }
  0x75   : >> { %v1944_v59 = vstv %s1881_s18  ;;  %v422_v60 = vmul.f32 %v1939_v57, %v1889_v40  ;;  %v455_v61 = vmul.f32 %v1939_v57, %v1892_v41  ;;  %v456_v62 = vmul.f32 %v1939_v57, %v1899_v43  ;;  %s1974_s9 = sld [smem:[#allocation4 + %s379_s6]]  ;;  %s381_s11 = sadd.s32 18, %s1845_s25 }
  0x76   : >> { %v400_v63 = vmul.f32 %v1944_v59, %v1910_v47  ;;  %v401_v0 = vmul.f32 %v1944_v59, %v1913_v48  ;;  %v1958_v1 = vstv %s1885_s7  ;;  %v480_v2 = vmul.f32 %v1944_v59, %v1902_v44  ;;  %s1998_s20 = sld [smem:[#allocation8 + %s1842_s22]] }
  0x77   : >> { %v403_v3 = vmul.f32 %v1958_v1, %v1902_v44  ;;  %v1965_v4 = vstv %s1895_s26  ;;  %v423_v5 = vsub.f32 %v419_v55, %v422_v60  ;;  %v424_v6 = vsub.f32 %v420_v56, %v422_v60  ;;  %s2004_s25 = sld [smem:[#allocation4 + %s381_s11]] }
  0x78   : >> { %v410_v7 = vmul.f32 %v1965_v4, %v1923_v51  ;;  %v411_v8 = vmul.f32 %v1965_v4, %v1926_v52  ;;  %v1972_v9 = vstv %s1906_s5  ;;  %v457_v10 = vadd.f32 %v455_v61, %v454_v58 }
  0x79   : >> { %v404_v11 = vsub.f32 %v400_v63, %v403_v3  ;;  %v405_v13 = vsub.f32 %v401_v0, %v403_v3  ;;  %v406_v16 = vstv %s1919_s27  ;;  %v413_v17 = vmul.f32 %v1972_v9, %v1916_v49 }
  0x7a   : >> { %v425_v18 = vmul.f32 %v423_v5, %v406_v16  ;;  %v426_v19 = vmul.f32 %v424_v6, %v406_v16  ;;  %v458_v20 = vadd.f32 %v456_v62, %v454_v58  ;;  %v459_v21 = vstv %s1932_s13 }
  0x7b   : >> { %v1980_v22 = vmul.f32 %v406_v16, %v404_v11  ;;  %v1982_v23 = vmul.f32 %v406_v16, %v405_v13  ;;  %v414_v24 = vsub.f32 %v410_v7, %v413_v17  ;;  %v415_v25 = vsub.f32 %v411_v8, %v413_v17 }
  0x7c   : >> { %vm433_vm0 = vcmp.ge.f32.partialorder %v425_v18, 0.0  ;;  %vm434_vm1 = vcmp.ge.f32.partialorder %v426_v19, 0.0  ;;  %v446_v36 = vmul.f32 %v445_v54, %v425_v18  ;;  %v447_v37 = vmul.f32 %v445_v54, %v426_v19 }
  0x7d   : >> { %v1984_v38 = vmul.f32 %v414_v24, %v406_v16  ;;  %v1986_v39 = vmul.f32 %v415_v25, %v406_v16  ;;  %vm427_vm2 = vcmp.ge.f32.partialorder %v1980_v22, 0.0  ;;  %vm428_vm3 = vcmp.ge.f32.partialorder %v1982_v23, 0.0 }
  0x7e   : >> { %v438_v42 = vmul.f32 %v437_v46, %v1980_v22  ;;  %v439_v45 = vmul.f32 %v437_v46, %v1982_v23  ;;  %v460_v55 = vmul.f32 %v459_v21, %v457_v10  ;;  %v461_v56 = vmul.f32 %v459_v21, %v458_v20 }
  0x7f   : >> { %vm429_vm4 = vcmp.ge.f32.partialorder %v1984_v38, 0.0  ;;  %vm430_vm5 = vcmp.ge.f32.partialorder %v1986_v39, 0.0  ;;  %v441_v54 = vmul.f32 %v440_v50, %v1984_v38  ;;  %v442_v58 = vmul.f32 %v440_v50, %v1986_v39 }
  0x80   : >> { %v462_v60 = vmax.f32 %v460_v55, 0.0  ;;  %v463_v61 = vmax.f32 %v461_v56, 0.0  ;;  %v481_v62 = vmul.f32 %v1958_v1, %v1910_v47  ;;  %v482_v46 = vmul.f32 %v1958_v1, %v1913_v48  ;;  %vm431_vm6 = vmand %vm427_vm2, %vm429_vm4 }
  0x81   : >> { %v443_v63 = vadd.f32 %v441_v54, %v438_v42  ;;  %v444_v0 = vadd.f32 %v442_v58, %v439_v45  ;;  %v485_v3 = vstv %s1974_s9  ;;  %v506_v50 = vmul.f32 %v1965_v4, %v1916_v49  ;;  %vm432_vm7 = vmand %vm428_vm3, %vm430_vm5 }
  0x82   : >> { %v464_v5 = vmin.f32 %v462_v60, 1.0  ;;  %v465_v6 = vmin.f32 %v463_v61, 1.0  ;;  %v483_v7 = vadd.f32 %v481_v62, %v480_v2  ;;  %v484_v8 = vadd.f32 %v482_v46, %v480_v2  ;;  %vm2020_vm8 = vmand %vm431_vm6, %vm433_vm0 }
  0x83   : >> { %v448_v10 = vadd.f32 %v446_v36, %v443_v63  ;;  %v449_v11 = vadd.f32 %v447_v37, %v444_v0  ;;  %v507_v13 = vmul.f32 %v1972_v9, %v1923_v51  ;;  %v508_v16 = vmul.f32 %v1972_v9, %v1926_v52  ;;  %vm2029_vm10 = vmand %vm432_vm7, %vm434_vm1 }
  0x84   : >> { %v466_v2 = vmul.f32 %v464_v5, %v1929_v53  ;;  %v467_v20 = vmul.f32 %v465_v6, %v1929_v53  ;;  %v470_v21 = vmul.f32 %v464_v5, %v1939_v57  ;;  %v471_v24 = vmul.f32 %v465_v6, %v1939_v57 }
  0x85   : >> { %vm450_vm9 = vcmp.gt.f32.partialorder %v448_v10, 0.0  ;;  %v486_v25 = vmul.f32 %v485_v3, %v483_v7  ;;  %v487_v36 = vmul.f32 %v485_v3, %v484_v8  ;;  %vm451_vm11 = vcmp.gt.f32.partialorder %v449_v11, 0.0 }
  0x86   : >> { %v468_v18 = vsub.f32 %v1889_v40, %v466_v2  ;;  %v469_v42 = vsub.f32 %v1889_v40, %v467_v20  ;;  %v472_v53 = vsub.f32 %v1892_v41, %v470_v21  ;;  %vm2038_vm12 = vmand %vm2020_vm8, %vm450_vm9  ;;  %v509_v55 = vadd.f32 %v507_v13, %v506_v50 }
  0x87   : >> { %v488_v45 = vmax.f32 %v486_v25, 0.0  ;;  %v489_v19 = vmax.f32 %v487_v36, 0.0  ;;  %v510_v56 = vadd.f32 %v508_v16, %v506_v50  ;;  %v473_v54 = vsub.f32 %v1899_v43, %v471_v24  ;;  %vm2046_vm13 = vmand %vm2029_vm10, %vm451_vm11 }
  0x88   : >> { %v474_v58 = vmul.f32 %v468_v18, %v468_v18  ;;  %v546_v60 = vstv %s1998_s20  ;;  %v511_v62 = vstv %s2004_s25  ;;  %vm540_vm14 = vcmp.lt.f32.partialorder %v448_v10, %v1534_v35 }
  0x89   : >> { %v490_v41 = vmin.f32 %v488_v45, 1.0  ;;  %v491_v61 = vmin.f32 %v489_v19, 1.0  ;;  %v475_v46 = vmul.f32 %v469_v42, %v469_v42  ;;  %v476_v63 = vmul.f32 %v472_v53, %v472_v53  ;;  %vm2054_vm15 = vmand %vm2038_vm12, %vm540_vm14 }
  0x8a   : >> { %v512_v0 = vmul.f32 %v511_v62, %v509_v55  ;;  %v513_v3 = vmul.f32 %v511_v62, %v510_v56  ;;  %vm541_vm0 = vcmp.lt.f32.partialorder %v449_v11, %v1530_v34  ;;  %v2066_v35 = vsel %vm2054_vm15, %v448_v10, %v1534_v35  }
  0x8b   : >> { %v492_v50 = vmul.f32 %v490_v41, %v1944_v59  ;;  %v493_v5 = vmul.f32 %v491_v61, %v1944_v59  ;;  %v496_v6 = vmul.f32 %v490_v41, %v1958_v1  ;;  %v497_v7 = vmul.f32 %v491_v61, %v1958_v1  ;;  %vm2074_vm1 = vmand %vm2046_vm13, %vm541_vm0 }
  0x8c   : >> { %v514_v8 = vmax.f32 %v512_v0, 0.0  ;;  %v515_v13 = vmax.f32 %v513_v3, 0.0  ;;  %v2419_v2 = vmov %v2066_v35  ;;  %v545_v10 = vsel %vm2074_vm1, %v449_v11, %v1530_v34  }
  0x8d   : >> { %v494_v16 = vsub.f32 %v1902_v44, %v492_v50  ;;  %v495_v20 = vsub.f32 %v1902_v44, %v493_v5  ;;  %v498_v21 = vsub.f32 %v1910_v47, %v496_v6  ;;  %v499_v59 = vsub.f32 %v1913_v48, %v497_v7 }
  0x8e   : >> { %v516_v24 = vmin.f32 %v514_v8, 1.0  ;;  %v517_v25 = vmin.f32 %v515_v13, 1.0  ;;  %v547_v44 = vsel %vm2054_vm15, %v546_v60, %v1526_v33   ;;  %v477_v45 = vmul.f32 %v473_v54, %v473_v54 }
  0x8f   : >> { %v500_v35 = vmul.f32 %v494_v16, %v494_v16  ;;  %v501_v47 = vmul.f32 %v495_v20, %v495_v20  ;;  %v502_v36 = vmul.f32 %v498_v21, %v498_v21  ;;  %v503_v48 = vmul.f32 %v499_v59, %v499_v59 }
  0x90   : >> { %v518_v18 = vmul.f32 %v516_v24, %v1965_v4  ;;  %v519_v42 = vmul.f32 %v517_v25, %v1965_v4  ;;  %v522_v53 = vmul.f32 %v516_v24, %v1972_v9  ;;  %v523_v57 = vmul.f32 %v517_v25, %v1972_v9 }
  0x91   : >> { %v504_v19 = vadd.f32 %v502_v36, %v500_v35  ;;  %v548_v11 = vsel %vm2074_vm1, %v546_v60, %v1522_v32   ;;  %v549_v55 = vsel %vm2054_vm15, %v1980_v22, %v1518_v31   ;;  %v505_v9 = vadd.f32 %v503_v48, %v501_v47 }
  0x92   : >> { %v520_v33 = vsub.f32 %v1916_v49, %v518_v18  ;;  %v521_v34 = vsub.f32 %v1916_v49, %v519_v42  ;;  %v524_v4 = vsub.f32 %v1923_v51, %v522_v53  ;;  %v525_v56 = vsub.f32 %v1926_v52, %v523_v57 }
  0x93   : >> { %v550_v54 = vsel %vm2074_vm1, %v1982_v23, %v1514_v30   ;;  %v551_v60 = vsel %vm2054_vm15, %v1984_v38, %v1510_v29   ;;  %v552_v49 = vsel %vm2074_vm1, %v1986_v39, %v1506_v28   ;;  %v478_v22 = vadd.f32 %v476_v63, %v474_v58 }
  0x94   : >> { %v526_v31 = vmul.f32 %v520_v33, %v520_v33  ;;  %v527_v32 = vmul.f32 %v521_v34, %v521_v34  ;;  %v528_v51 = vmul.f32 %v524_v4, %v524_v4  ;;  %v529_v52 = vmul.f32 %v525_v56, %v525_v56 }
  0x95   : >> { %v479_v40 = vadd.f32 %v477_v45, %v475_v46  ;;  %v2429_v33 = vmov %v547_v44  ;;  %v2430_v34 = vmov %v545_v10  ;;  %v2431_v35 = vmov %v2419_v2 }
  0x96   : >> { %v530_v41 = vadd.f32 %v528_v51, %v526_v31  ;;  %v531_v61 = vadd.f32 %v529_v52, %v527_v32  ;;  %v2427_v31 = vmov %v549_v55  ;;  %v2428_v32 = vmov %v548_v11 }
  0x97   : > { %v2434_v18 = vmov (%p330_p13), %v552_v49  ;;  %v2436_v20 = vmov (%p330_p13), %v550_v54  ;;  %v2437_v21 = vmov (%p330_p13), %v549_v55  ;;  %v2440_v24 = vmov (%p330_p13), %v545_v10 }
  0x98   : >> { %v532_v62 = vmin.f32 %v504_v19, %v530_v41  ;;  %v533_v30 = vmin.f32 %v505_v9, %v531_v61  ;;  %v2435_v19 = vmov (%p330_p13), %v551_v60  ;;  %v2441_v25 = vmov (%p330_p13), %v2419_v2 }
  0x9a   : >> { %v534_v23 = vmin.f32 %v478_v22, %v532_v62  ;;  %v535_v0 = vmin.f32 %v479_v40, %v533_v30  ;;  %v2426_v30 = vmov %v550_v54  ;;  %333 = sbr.rel (!%p330_p13) target bundleno = 95 (0x5f), region = 128  ;;  %v2438_v22 = vmov (%p330_p13), %v548_v11 }
  0x9c   : >> { %v536_v3 = vsub.f32 0.0, %v534_v23  ;;  %v537_v50 = vsub.f32 0.0, %v535_v0 }
  0x9e   : >> { %v538_v29 = vsel %vm2020_vm8, %v536_v3, %v534_v23  ;;  %v539_v28 = vsel %vm2029_vm10, %v537_v50, %v535_v0  ;;  %v2439_v23 = vmov (%p330_p13), %v547_v44 }
  0x9f   : >> { %v553_v38 = vsel %vm2054_vm15, %v538_v29, %v1502_v27   ;;  %v554_v39 = vsel %vm2074_vm1, %v539_v28, %v1498_v26   ;;  %v2424_v28 = vmov %v552_v49  ;;  %v2425_v29 = vmov %v551_v60 }
  0xa0   : >> { %v2422_v26 = vmov %v554_v39  ;;  %v2423_v27 = vmov %v553_v38  ;;  %v2432_v16 = vmov (%p330_p13), %v554_v39  ;;  %v2433_v17 = vmov (%p330_p13), %v553_v38 }
  0xa1 PF: > { %vm555_vm2 = vcmp.ge.s32.totalorder %v1570_v23, 0  ;;  %vm556_vm3 = vcmp.ge.s32.totalorder %v1566_v22, 0  ;;  %557 = vst [vmem:[%s1755_s29] sm:$0xff] %v1570_v23  ;;  %558 = vst [vmem:[%s1755_s29 + $0x8] sm:$0xff] %v1566_v22  ;;  %v568_v12 = vsub.f32 1.0, %v1562_v21  ;;  %v569_v14 = vsub.f32 1.0, %v1558_v20  ;;  %s584_s28 = sand.u32 1, %s1667_s12   ;;  %v1578_v25 = vphi %v1782_v25, %v2441_v25   ;;  %v1574_v24 = vphi %v1780_v24, %v2440_v24   ;;  %v1570_v23 = vphi %v1778_v23, %v2439_v23   ;;  %v1566_v22 = vphi %v1776_v22, %v2438_v22   ;;  %v1562_v21 = vphi %v1774_v21, %v2437_v21   ;;  %v1558_v20 = vphi %v1772_v20, %v2436_v20   ;;  %v1554_v19 = vphi %v1770_v19, %v2435_v19   ;;  %v1550_v18 = vphi %v1768_v18, %v2434_v18   ;;  %v1546_v17 = vphi %v1766_v17, %v2433_v17   ;;  %v1542_v16 = vphi %v1764_v16, %v2432_v16  }
  0xa2   : > { %563 = vst [vmem:[%s1759_s15] sm:$0xff] %v1562_v21  ;;  %564 = vst [vmem:[%s1759_s15 + $0x8] sm:$0xff] %v1558_v20  ;;  %s2187_s21 = sshll.u32 %s1486_s10, 8  ;;  %v559_v15 = vsel %vm555_vm2, %v1578_v25, -1.0  ;;  %v560_v26 = vsel %vm556_vm3, %v1574_v24, -1.0  ;;  %s630_s8 = sshll.u32 %s1757_s30, 4  ;;  %s2202_s8 = int_to_ptr.vmem [resolvable:$true] %s630_s8 }
  0xa3   : > { %909 = vst [vmem:[%s1759_s15 + $0x10] sm:$0xff] %v1554_v19  ;;  %910 = vst [vmem:[%s1759_s15 + $0x18] sm:$0xff] %v1550_v18  ;;  %v570_v27 = vsub.f32 %v568_v12, %v1554_v19  ;;  %v571_v37 = vsub.f32 %v569_v14, %v1550_v18  ;;  %s2197_s19 = scalar_lea.hbm %s2371_s4, %s2187_s21  ;;  %s2208_s7 = scalar_lea.hbm %s2370_s3, %s2187_s21 }
  0xa4   : > { %577 = vst [vmem:[%s1761_s17] sm:$0xff] %v1546_v17  ;;  %578 = vst [vmem:[%s1761_s17 + $0x8] sm:$0xff] %v1542_v16  ;;  %s2212_s1 = scalar_lea.sflag [#allocation11], %s584_s28  ;;  %s1230_s26 = scalar_lea.vmem %s2202_s8, 256 }
  0xa5   : > { %561 = vst [vmem:[%s1757_s30] sm:$0xff] %v559_v15  ;;  %562 = vst [vmem:[%s1757_s30 + $0x8] sm:$0xff] %v560_v26  ;;  %v572_v17 = vsel %vm555_vm2, %v570_v27, -1.0  ;;  %v573_v58 = vsel %vm556_vm3, %v571_v37, -1.0  ;;  %p1231_p2 = scmp.ne.s32.totalorder %s2202_s8, %s1230_s26  ;;  %s1583_s30 = smov [#allocation10]  }
  0xa6   : > { %911 = vst [vmem:[%s1759_s15 + $0x20] sm:$0xff] %v572_v17  ;;  %912 = vst [vmem:[%s1759_s15 + $0x28] sm:$0xff] %v573_v58  ;;  %s1234_s2 = sshll.u32 %s1583_s30, 4  ;;  %s1235_s2 = int_to_ptr.vmem [resolvable:$false] %s1234_s2 }
  0xa7   : > { %p1232_p9 = pnand %p1231_p2, %p1679_p7  ;;  %s1236_s5 = scalar_lea.vmem %s1235_s2, 512 }
  0xa8   : > { %p1237_p12 = scmp.lt.s32.totalorder %s2202_s8, %s1235_s2  ;;  %p1238_p1 = scmp.lt.s32.totalorder %s1236_s5, %s1230_s26 }
  0xa9   : > { %p1233_p10 = pneg %p1232_p9 }
  0xaa   : > { %p1239_p3 = por %p1238_p1, %p1237_p12 }
  0xac   : > { %p1240_p5 = pnand %p1239_p3, %p1233_p10 }
  0xae   : > { %1243 = shalt.err (!%p1240_p5)
}
  0xaf   : > { %s1244_s0 = scalar_lea.hbm %s2197_s19, 256  ;;  %s1248_s13 = scalar_lea.hbm %s2371_s4, 512 }
  0xb0   : > { %p1245_p6 = scmp.ne.s32.totalorder %s2197_s19, %s1244_s0  ;;  %p1249_p0 = scmp.lt.u32.totalorder %s2197_s19, %s2371_s4 }
  0xb1   : > { %p1250_p11 = scmp.lt.u32.totalorder %s1248_s13, %s1244_s0  ;;  %p1252_p2 = scmp.lt.u32.totalorder %s1244_s0, %s2197_s19 }
  0xb2   : > { %p1246_p8 = pnand %p1245_p6, %p1679_p7 }
  0xb3   : > { %p1251_p13 = por %p1250_p11, %p1249_p0 }
  0xb4   : > { %p1247_p4 = pneg %p1246_p8 }
  0xb5   : > { %p1253_p9 = por %p1252_p2, %p1251_p13 }
  0xb7   : > { %p1254_p10 = pnand %p1253_p9, %p1247_p4 }
  0xb9   : > { %1257 = shalt.err (!%p1254_p10)
}
  0xba   : > { %s1584_s11 = smov 128   ;;  %s1585_s20 = smov 8  }
  0xbb   : > { %939 = dma.vmem_to_hbm [thread:$0]  (%p1679_p7), %s2202_s8, 256, %s2197_s19, %s2212_s1, %s1584_s11, %s1584_s11, %s1585_s20  }
  0xbc   : > { %s611_s25 = sshll.u32 %s1755_s29, 4  ;;  %s929_s28 = smul.u32 768, %s1486_s10  ;;  %s2241_s25 = int_to_ptr.vmem [resolvable:$true] %s611_s25 }
  0xbd   : > { %s649_s22 = sshll.u32 %s1759_s15, 4  ;;  %s580_s14 = scalar_lea.sflag [#allocation5], %s1741_s23  ;;  %s2280_s22 = int_to_ptr.vmem [resolvable:$true] %s649_s22 }
  0xbe   : > { %s1258_s12 = scalar_lea.vmem %s2241_s25, 256  ;;  %s1586_s18 = smov [#allocation9]  }
  0xbf   : > { %p1259_p12 = scmp.ne.s32.totalorder %s2241_s25, %s1258_s12  ;;  %s1262_s26 = sshll.u32 %s1586_s18, 4  ;;  %s1263_s26 = int_to_ptr.vmem [resolvable:$false] %s1262_s26 }
  0xc0   : > { %s1264_s30 = scalar_lea.vmem %s1263_s26, 512  ;;  %p1265_p5 = scmp.lt.s32.totalorder %s2241_s25, %s1263_s26 }
  0xc1   : > { %p1260_p1 = pnand %p1259_p12, %p1679_p7  ;;  %p1266_p6 = scmp.lt.s32.totalorder %s1264_s30, %s1258_s12 }
  0xc3   : > { %p1261_p3 = pneg %p1260_p1  ;;  %p1267_p8 = por %p1266_p6, %p1265_p5 }
  0xc5   : > { %p1268_p4 = pnand %p1267_p8, %p1261_p3 }
  0xc7   : > { %1271 = shalt.err (!%p1268_p4)
}
  0xc8   : > { %s1272_s29 = scalar_lea.hbm %s2208_s7, 256  ;;  %s1276_s2 = scalar_lea.hbm %s2370_s3, 512 }
  0xc9   : > { %p1273_p0 = scmp.ne.s32.totalorder %s2208_s7, %s1272_s29  ;;  %p1277_p2 = scmp.lt.u32.totalorder %s2208_s7, %s2370_s3 }
  0xca   : > { %p1278_p9 = scmp.lt.u32.totalorder %s1276_s2, %s1272_s29  ;;  %p1280_p12 = scmp.lt.u32.totalorder %s1272_s29, %s2208_s7 }
  0xcb   : > { %p1274_p11 = pnand %p1273_p0, %p1679_p7 }
  0xcc   : > { %p1279_p10 = por %p1278_p9, %p1277_p2 }
  0xcd   : > { %p1275_p13 = pneg %p1274_p11 }
  0xce   : > { %p1281_p1 = por %p1280_p12, %p1279_p10 }
  0xd0   : > { %p1282_p3 = pnand %p1281_p1, %p1275_p13 }
  0xd2   : > { %1285 = shalt.err (!%p1282_p3)
}
  0xd3   : > { %938 = dma.vmem_to_hbm [thread:$0]  (%p1679_p7), %s2241_s25, 256, %s2208_s7, %s580_s14, %s1584_s11, %s1584_s11, %s1585_s20  }
  0xd4   : > { %s2442_s13 = sld [smem:[#allocation31_spill]]  ;;  %s1286_s9 = scalar_lea.vmem %s2280_s22, 768 }
  0xd5   : > { %p1287_p5 = scmp.ne.s32.totalorder %s2280_s22, %s1286_s9  ;;  %s1587_s12 = smov [#allocation12]  }
  0xd6   : > { %s1290_s18 = sshll.u32 %s1587_s12, 4  ;;  %s1291_s18 = int_to_ptr.vmem [resolvable:$false] %s1290_s18 }
  0xd7   : > { %p1288_p6 = pnand %p1287_p5, %p1679_p7  ;;  %s1292_s10 = scalar_lea.vmem %s1291_s18, 1536 }
  0xd8   : > { %p1293_p4 = scmp.lt.s32.totalorder %s2280_s22, %s1291_s18  ;;  %p1294_p0 = scmp.lt.s32.totalorder %s1292_s10, %s1286_s9 }
  0xd9   : > { %p1289_p8 = pneg %p1288_p6 }
  0xda   : > { %s2276_s6 = scalar_lea.hbm %s2442_s13, %s929_s28  ;;  %p1295_p11 = por %p1294_p0, %p1293_p4 }
  0xdc   : > { %p1296_p13 = pnand %p1295_p11, %p1289_p8 }
  0xde   : > { %1299 = shalt.err (!%p1296_p13)
}
  0xdf   : > { %s1300_s15 = scalar_lea.hbm %s2276_s6, 768  ;;  %s1304_s28 = scalar_lea.hbm %s2442_s13, 1536 }
  0xe0   : > { %p1301_p2 = scmp.ne.s32.totalorder %s2276_s6, %s1300_s15  ;;  %p1305_p12 = scmp.lt.u32.totalorder %s2276_s6, %s2442_s13 }
  0xe1   : > { %p1306_p1 = scmp.lt.u32.totalorder %s1304_s28, %s1300_s15  ;;  %p1308_p5 = scmp.lt.u32.totalorder %s1300_s15, %s2276_s6 }
  0xe2   : > { %p1302_p9 = pnand %p1301_p2, %p1679_p7 }
  0xe3   : > { %p1307_p3 = por %p1306_p1, %p1305_p12 }
  0xe4   : > { %p1303_p10 = pneg %p1302_p9 }
  0xe5   : > { %p1309_p6 = por %p1308_p5, %p1307_p3 }
  0xe7   : > { %p1310_p8 = pnand %p1309_p6, %p1303_p10 }
  0xe9   : > { %1313 = shalt.err (!%p1310_p8)
}
  0xea   : > { %940 = dma.vmem_to_hbm [thread:$0]  (%p1679_p7), %s2280_s22, 768, %s2276_s6, %s2212_s1, %s1584_s11, %s1584_s11, %s1585_s20  }
  0xeb   : > { %s2443_s19 = sld [smem:[#allocation32_spill]]  ;;  %s668_s2 = sshll.u32 %s1761_s17, 4  ;;  %s2314_s2 = int_to_ptr.vmem [resolvable:$true] %s668_s2 }
  0xec   : > { %s595_s5 = scalar_lea.sflag [#allocation14], %s1741_s23  ;;  %s1314_s0 = scalar_lea.vmem %s2314_s2, 256 }
  0xed   : > { %p1315_p4 = scmp.ne.s32.totalorder %s2314_s2, %s1314_s0  ;;  %s1588_s27 = smov [#allocation13]  }
  0xee   : > { %s1318_s24 = sshll.u32 %s1588_s27, 4  ;;  %s1319_s24 = int_to_ptr.vmem [resolvable:$false] %s1318_s24 }
  0xef   : > { %p1316_p0 = pnand %p1315_p4, %p1679_p7  ;;  %s1320_s1 = scalar_lea.vmem %s1319_s24, 512 }
  0xf0   : > { %p1321_p13 = scmp.lt.s32.totalorder %s2314_s2, %s1319_s24  ;;  %p1322_p2 = scmp.lt.s32.totalorder %s1320_s1, %s1314_s0 }
  0xf1   : > { %s2311_s8 = scalar_lea.hbm %s2443_s19, %s2187_s21  ;;  %p1317_p11 = pneg %p1316_p0 }
  0xf2   : > { %p1323_p9 = por %p1322_p2, %p1321_p13 }
  0xf4   : > { %p1324_p10 = pnand %p1323_p9, %p1317_p11 }
  0xf6   : > { %1327 = shalt.err (!%p1324_p10)
}
  0xf7   : > { %s1328_s17 = scalar_lea.hbm %s2311_s8, 256  ;;  %s1332_s6 = scalar_lea.hbm %s2443_s19, 512 }
  0xf8   : > { %p1329_p12 = scmp.ne.s32.totalorder %s2311_s8, %s1328_s17  ;;  %p1333_p5 = scmp.lt.u32.totalorder %s2311_s8, %s2443_s19 }
  0xf9   : > { %p1334_p6 = scmp.lt.u32.totalorder %s1332_s6, %s1328_s17  ;;  %p1336_p4 = scmp.lt.u32.totalorder %s1328_s17, %s2311_s8 }
  0xfa   : > { %p1330_p1 = pnand %p1329_p12, %p1679_p7 }
  0xfb   : > { %p1335_p8 = por %p1334_p6, %p1333_p5 }
  0xfc   : > { %p1331_p3 = pneg %p1330_p1 }
  0xfd   : > { %p1337_p0 = por %p1336_p4, %p1335_p8 }
  0xff   : > { %p1338_p11 = pnand %p1337_p0, %p1331_p3 }
 0x101   : > { %1341 = shalt.err (!%p1338_p11)
}
 0x102   : > { %941 = dma.vmem_to_hbm [thread:$0]  (%p1679_p7), %s2314_s2, 256, %s2311_s8, %s595_s5, %s1584_s11, %s1584_s11, %s1585_s20  }
 0x103 PF: > { %s2444_s18 = sld [smem:[#allocation25_spill]]  ;;  %s2445_s10 = sld [smem:[#allocation21_spill]] }
 0x104   : > { %s2446_s15 = sld [smem:[#allocation27_spill]] }
 0x109   : > { %p970_p13 = scmp.ge.s32.totalorder %s2444_s18, 2  ;;  %s683_s7 = sand.u32 1, %s2445_s10  }
 0x10a   : > { %p2447_p2 = scmp.ne.s32.totalorder %s2446_s15, 0  ;;  %s684_s25 = scalar_lea.sflag [#allocation5], %s683_s7 }
 0x10c   : > { %p954_p9 = pnand %p970_p13, %p2447_p2 }
 0x10e   : > { %1461 = dma.done.wait (!%p954_p9), %s684_s25, 256  }
 0x10f   : > { %1463 = vsyncadd (!%p954_p9), %s684_s25, 4294967040  ;;  %s2448_s16 = sadd.s32 4294967294, %s2444_s18  }
 0x110   : > { %s692_s28 = sand.u32 1, %s2448_s16  }
 0x111   : > { %s693_s14 = scalar_lea.sflag [#allocation11], %s692_s28 }
 0x112   : > { %1465 = dma.done.wait (!%p954_p9), %s693_s14, 1024  }
 0x113   : > { %1467 = vsyncadd (!%p954_p9), %s693_s14, 4294966272  ;;  %s711_s23 = scalar_lea.sflag [#allocation14], %s683_s7 }
 0x114   : > { %1469 = dma.done.wait (!%p954_p9), %s711_s23, 256  }
 0x115   : > { %1471 = vsyncadd (!%p954_p9), %s711_s23, 4294967040  ;;  %s32_s11 = sadd.s32 1, %s2444_s18   ;;  %s2449_s7 = sld [smem:[#allocation22_spill]] }
 0x116   : > { %p29_p7 = scmp.ge.s32.totalorder %s32_s11, 4   ;;  %s2450_s8 = sld [smem:[#allocation23_spill]] }
 0x117   : > { %s2451_s9 = sld [smem:[#allocation28_spill]]  ;;  %s2452_s10 = sld [smem:[#allocation24_spill]] }
 0x118   : > { %s2453_s0 = sld [smem:[#allocation26_spill]]  ;;  %31 = sbr.rel (!%p29_p7) target bundleno = 23 (0x17), region = 139 }
 0x11f   :  { %716 = vsyncpa [#allocation5], 1 }
 0x120   :  { %718 = vsyncpa [#allocation5 + $0x1], 1 }
 0x121   :  { %719 = vsyncpa [#allocation11], 1 }
 0x122   :  { %721 = vsyncpa [#allocation11 + $0x1], 1 }
 0x123   :  { %722 = vsyncpa [#allocation14], 1 }
 0x124   :  { %724 = vsyncpa [#allocation14 + $0x1], 1 }
 0x125   :  { %725 = vsyncpa [#allocation6], 1 }
 0x126   :  { %727 = vsyncpa [#allocation6 + $0x1], 1 }
 0x127   :  { %728 = vsyncpa [#allocation7], 1 }
 0x128   :  { %730 = vsyncpa [#allocation7 + $0x1], 1 }

</bundles_post_ra>
